<compile_context>
chip_gen: v7x
topology: tpu7x:2x2x1
jax: 0.10.0
libtpu: 0.0.40
codegen_flags: <defaults>
</compile_context>

<pallas_src>
import functools

import jax
import jax.numpy as jnp
from jax.experimental import pallas as pl
from jax.experimental.pallas import tpu as pltpu


def _round_up(x, m):
    return ((x + m - 1) // m) * m


def _vmem_budget():
    """VMEM budget (bytes) with headroom for compiler/internal scratch."""
    phys = 64 * 1024 * 1024
    try:
        phys = int(pltpu.get_tpu_info().vmem_capacity_bytes)
    except Exception:
        pass
    # ~25% headroom; never request more than ~100 MiB even on 128 MiB parts.
    return int(min((phys * 3) // 4, 100 * 1024 * 1024))


def _choose_tiles(B, D, itemsize, block_i, block_j, vmem_budget):
    # Lane-facing tile (columns of the score block / rows of s): multiple of 128.
    if block_j is not None:
        tile_j = _round_up(block_j, 128)
    else:
        tile_j = min(512, _round_up(B, 128))
    tile_j = min(max(tile_j, 128), _round_up(B, 128))

    if block_i is not None:
        tile_i = _round_up(block_i, 8)
    else:
        bpj = _round_up(B, tile_j)
        # Bytes that scale with tile_i: im double-buffer, lane-padded dcol
        # double-buffer, f32 score/cost temps + the elementwise accumulator.
        per_row = 2 * D * itemsize + 2 * 128 * 4 + 8 * tile_j * 4
        fixed = (2 * tile_j * D * itemsize     # s double-buffer
                 + 2 * 8 * tile_j * 4          # drow double-buffer (sublane pad)
                 + 2 * 8 * bpj * 4             # colmax output block
                 + 2 * 8 * 128 * 4)            # psum output block
        tile_i = (vmem_budget - fixed) // per_row
        tile_i = max(8, min(int(tile_i), 4096))
        tile_i = (tile_i // 8) * 8
    tile_i = min(max(tile_i, 8), _round_up(B, 8))
    return int(tile_i), int(tile_j)


def _contrastive_loss_kernel(
    im_ref, s_ref, dcol_ref, drow_ref,       # inputs
    psum_ref, colmax_ref,                    # outputs
    acc_ref,                                 # scratch: (tile_i, tile_j) f32
    *, margin, max_violation, batch, tile_i, tile_j,
):
    i = pl.program_id(0)
    j = pl.program_id(1)
    nj = pl.num_programs(1)

    # (tile_i, tile_j) score block on the MXU; transpose folded into the
    # contraction, bf16 (or native) operands, f32 accumulation.
    scores = jax.lax.dot_general(
        im_ref[...], s_ref[...],
        dimension_numbers=(((1,), (1,)), ((), ())),
        preferred_element_type=jnp.float32,
    )

    # eye + padding masks folded into a single select: invalid entries -> -inf
    # so both hinges relu to exactly 0.
    row = i * tile_i + jax.lax.broadcasted_iota(jnp.int32, (tile_i, tile_j), 0)
    col = j * tile_j + jax.lax.broadcasted_iota(jnp.int32, (tile_i, tile_j), 1)
    keep = (row != col) & (row < batch) & (col < batch)
    base = jnp.where(keep, scores + jnp.float32(margin), -jnp.inf)
    # TODO(synk): gate the mask construction behind (i == j) | boundary blocks
    # if D is small enough that the VALU, not the MXU, saturates.

    d1 = dcol_ref[...].astype(jnp.float32)    # (tile_i, 1)  diag for these rows
    d2 = drow_ref[...].astype(jnp.float32)    # (1, tile_j)  diag for these cols
    cost_s = jnp.maximum(base - d1, 0.0)
    cost_im = jnp.maximum(base - d2, 0.0)

    @pl.when(j == 0)
    def _():
        acc_ref[...] = jnp.zeros_like(acc_ref)

    start = pl.multiple_of(j * tile_j, tile_j)

    if max_violation:
        # Elementwise running max across j blocks (VPU only); the single
        # cross-lane reduce happens once per i block at j == nj - 1.
        acc_ref[...] = jnp.maximum(acc_ref[...], cost_s)
        # Column max of this block -> its disjoint lane-dense column slice of
        # the per-i colmax output (reduced across i blocks in the wrapper).
        cmax = jnp.max(cost_im, axis=0, keepdims=True)            # (1, tile_j)
        colmax_ref[:, pl.ds(start, tile_j)] = jnp.broadcast_to(cmax, (8, tile_j))

        @pl.when(j == nj - 1)
        def _():
            rowsum = jnp.sum(jnp.max(acc_ref[...], axis=1, keepdims=True))
            psum_ref[...] = jnp.full((1, 8, 128), rowsum, jnp.float32)
    else:
        # Elementwise accumulate; single full reduction per i block.
        acc_ref[...] = acc_ref[...] + (cost_s + cost_im)
        colmax_ref[:, pl.ds(start, tile_j)] = jnp.zeros((8, tile_j), jnp.float32)

        @pl.when(j == nj - 1)
        def _():
            psum_ref[...] = jnp.full((1, 8, 128), jnp.sum(acc_ref[...]),
                                     jnp.float32)


def contrastive_loss(im, s, *, margin=0.2, max_violation=False, norm=True,
                     mxu_dtype=jnp.bfloat16, block_i=None, block_j=None):
    """Pallas ContrastiveLoss forward. im, s: (batch, embed_dim)."""
    assert im.ndim == 2 and s.ndim == 2 and im.shape == s.shape
    B, D = im.shape

    if mxu_dtype is None:
        mxu_dtype = im.dtype
    im_c = im.astype(mxu_dtype)
    s_c = s.astype(mxu_dtype)

    # Diagonal of im @ s.T computed directly in O(B*D) f32 from the same cast
    # operands the MXU sees; streamed in as (B,1)/(1,B) side inputs.
    diag = jnp.sum(im_c.astype(jnp.float32) * s_c.astype(jnp.float32), axis=1)

    itemsize = jnp.dtype(mxu_dtype).itemsize
    budget = _vmem_budget()
    tile_i, tile_j = _choose_tiles(B, D, itemsize, block_i, block_j, budget)

    Bp_i = _round_up(B, tile_i)
    Bp_j = _round_up(B, tile_j)
    ni = Bp_i // tile_i
    nj = Bp_j // tile_j

    im_p = jnp.pad(im_c, ((0, Bp_i - B), (0, 0))) if Bp_i != B else im_c
    s_p = jnp.pad(s_c, ((0, Bp_j - B), (0, 0))) if Bp_j != B else s_c
    dcol = jnp.pad(diag, (0, Bp_i - B)).reshape(Bp_i, 1)
    drow = jnp.pad(diag, (0, Bp_j - B)).reshape(1, Bp_j)

    kernel = functools.partial(
        _contrastive_loss_kernel,
        margin=float(margin),
        max_violation=bool(max_violation),
        batch=int(B),
        tile_i=tile_i,
        tile_j=tile_j,
    )

    # TODO(synk): for very large D (f32 >~4K) add a k grid axis tiling D with a
    # scores accumulator scratch so the input blocks fit v7x's 64 MiB VMEM.
    # TODO(synk): on v5e, pipeline_mode=pl.Buffered(3) on the s BlockSpec can
    # hide more of the re-stream DMA latency.
    psum, colmax = pl.pallas_call(
        kernel,
        out_shape=(
            jax.ShapeDtypeStruct((ni, 8, 128), jnp.float32),   # per-i partial sums
            jax.ShapeDtypeStruct((ni * 8, Bp_j), jnp.float32), # per-i column max
        ),
        grid=(ni, nj),
        in_specs=[
            pl.BlockSpec((tile_i, D), lambda i, j: (i, 0)),    # im rows
            pl.BlockSpec((tile_j, D), lambda i, j: (j, 0)),    # s rows (score cols)
            pl.BlockSpec((tile_i, 1), lambda i, j: (i, 0)),    # diag for rows
            pl.BlockSpec((1, tile_j), lambda i, j: (0, j)),    # diag for cols
        ],
        out_specs=(
            pl.BlockSpec((1, 8, 128), lambda i, j: (i, 0, 0)),
            pl.BlockSpec((8, Bp_j), lambda i, j: (i, 0)),
        ),
        scratch_shapes=[
            pltpu.VMEM((tile_i, tile_j), jnp.float32),         # elementwise acc
        ],
        compiler_params=pltpu.CompilerParams(
            # i shards across TensorCores on v7x (per-i partial outputs make
            # this safe); j is the streaming/reduction axis.
            dimension_semantics=("parallel", "arbitrary"),
            vmem_limit_bytes=int(budget),
        ),
    )(im_p, s_p, dcol, drow)

    total = jnp.sum(psum[:, 0, 0])
    if max_violation:
        cm = colmax.reshape(ni, 8, Bp_j)[:, 0, :]              # (ni, Bp_j)
        total = total + jnp.sum(jnp.max(cm, axis=0))
        denom = B
    else:
        denom = B * B
    if norm:
        total = total / jnp.float32(denom)
    return total


def _reference_loss(im, s, *, margin=0.2, max_violation=False, norm=True):
    """Pure-JAX reference for validation (exact f32 matmul)."""
    scores = jnp.matmul(im.astype(jnp.float32), s.astype(jnp.float32).T,
                        precision=jax.lax.Precision.HIGHEST)
    diag = jnp.diag(scores)
    cost_s = jnp.maximum(margin + scores - diag[:, None], 0.0)
    cost_im = jnp.maximum(margin + scores - diag[None, :], 0.0)
    eye = jnp.eye(scores.shape[0], dtype=bool)
    cost_s = jnp.where(eye, 0.0, cost_s)
    cost_im = jnp.where(eye, 0.0, cost_im)
    if max_violation:
        loss = jnp.max(cost_s, axis=1).sum() + jnp.max(cost_im, axis=0).sum()
        denom = im.shape[0]
    else:
        loss = cost_s.sum() + cost_im.sum()
        denom = im.shape[0] * s.shape[0]
    return loss / denom if norm else loss


if __name__ == "__main__":
    key = jax.random.PRNGKey(0)
    k_im, k_s = jax.random.split(key)

    batch, embed_dim = 8, 32
    im = jax.random.normal(k_im, (batch, embed_dim), dtype=jnp.float32)
    s = jax.random.normal(k_s, (batch, embed_dim), dtype=jnp.float32)

    # Default path: bf16 MXU operands (f32 accumulate); compare against a
    # reference computed on the same bf16-rounded inputs.
    loss = jax.block_until_ready(contrastive_loss(im, s, margin=0.2))
    im_r = im.astype(jnp.bfloat16).astype(jnp.float32)
    s_r = s.astype(jnp.bfloat16).astype(jnp.float32)
    ref = _reference_loss(im_r, s_r, margin=0.2)
    assert jnp.allclose(loss, ref, rtol=1e-3, atol=1e-3), (loss, ref)

    # f32 operands, non-multiple-of-tile batch, both reduction modes.
    batch2 = 12
    im2 = jax.random.normal(jax.random.PRNGKey(1), (batch2, embed_dim),
                            dtype=jnp.float32)
    s2 = jax.random.normal(jax.random.PRNGKey(2), (batch2, embed_dim),
                           dtype=jnp.float32)
    for mv in (False, True):
        got = jax.block_until_ready(contrastive_loss(
            im2, s2, margin=0.2, max_violation=mv, mxu_dtype=jnp.float32))
        want = _reference_loss(im2, s2, margin=0.2, max_violation=mv)
        assert jnp.allclose(got, want, rtol=1e-4, atol=1e-4), (mv, got, want)

    # Multi-tile grid (forced small tiles): exercises per-i partial sums,
    # the column-max partials across row blocks, and the padding masks.
    batch3 = 200
    im3 = jax.random.normal(jax.random.PRNGKey(3), (batch3, embed_dim),
                            dtype=jnp.float32)
    s3 = jax.random.normal(jax.random.PRNGKey(4), (batch3, embed_dim),
                           dtype=jnp.float32)
    for mv in (False, True):
        got = jax.block_until_ready(contrastive_loss(
            im3, s3, margin=0.2, max_violation=mv, mxu_dtype=jnp.float32,
            block_i=64, block_j=128))
        want = _reference_loss(im3, s3, margin=0.2, max_violation=mv)
        assert jnp.allclose(got, want, rtol=1e-4, atol=1e-4), (mv, got, want)

    print("KERNEL_OK")
</pallas_src>

<mosaic_0001>
module attributes {stable_mosaic.version = 11 : i64} {
  func.func @_contrastive_loss_kernel(%arg0: i32, %arg1: i32, %arg2: memref<8x32xbf16, #tpu.memory_space<vmem>>, %arg3: memref<128x32xbf16, #tpu.memory_space<vmem>>, %arg4: memref<8x1xf32, #tpu.memory_space<vmem>>, %arg5: memref<1x128xf32, #tpu.memory_space<vmem>>, %arg6: memref<1x8x128xf32, #tpu.memory_space<vmem>>, %arg7: memref<8x128xf32, #tpu.memory_space<vmem>>, %arg8: memref<8x128xf32, #tpu.memory_space<vmem>>) attributes {dimension_semantics = [#tpu.dimension_semantics<parallel>, #tpu.dimension_semantics<arbitrary>], iteration_bounds = array<i64: 1, 1>, scalar_prefetch = 0 : i64, scratch_operands = 1 : i64, tpu.core_type = #tpu.core_type<tc>, window_params = [{transform_indices = @transform_0, window_bounds = array<i64: 8, 32>}, {transform_indices = @transform_1, window_bounds = array<i64: 128, 32>}, {transform_indices = @transform_2, window_bounds = array<i64: 8, 1>}, {transform_indices = @transform_3, window_bounds = array<i64: 1, 128>}, {transform_indices = @transform_4, window_bounds = array<i64: 1, 8, 128>}, {transform_indices = @transform_5, window_bounds = array<i64: 8, 128>}]} {
    %c0 = arith.constant 0 : index
    %c0_0 = arith.constant 0 : index
    %0 = vector.load %arg2[%c0, %c0_0] : memref<8x32xbf16, #tpu.memory_space<vmem>>, vector<8x32xbf16>
    %c0_1 = arith.constant 0 : index
    %c0_2 = arith.constant 0 : index
    %1 = vector.load %arg3[%c0_1, %c0_2] : memref<128x32xbf16, #tpu.memory_space<vmem>>, vector<128x32xbf16>
    %cst = arith.constant dense<0.000000e+00> : vector<8x128xf32>
    %2 = tpu.matmul %0, %1, %cst {dimension_numbers = #tpu.dot_dimension_numbers<[1], [1], [0], [0], [0, 0, 1, 0], [], []>} : vector<8x32xbf16>, vector<128x32xbf16>, vector<8x128xf32> -> vector<8x128xf32>
    %c8_i32 = arith.constant 8 : i32
    %3 = arith.muli %arg0, %c8_i32 : i32
    %4 = tpu.iota {dimensions = array<i32: 0>} : vector<8x128xi32>
    %5 = vector.broadcast %3 : i32 to vector<8x128xi32>
    %6 = arith.addi %5, %4 : vector<8x128xi32>
    %c128_i32 = arith.constant 128 : i32
    %7 = arith.muli %arg1, %c128_i32 : i32
    %8 = tpu.iota {dimensions = array<i32: 1>} : vector<8x128xi32>
    %9 = vector.broadcast %7 : i32 to vector<8x128xi32>
    %10 = arith.addi %9, %8 : vector<8x128xi32>
    %11 = arith.cmpi ne, %6, %10 : vector<8x128xi32>
    %c8_i32_3 = arith.constant 8 : i32
    %12 = vector.broadcast %c8_i32_3 : i32 to vector<8x128xi32>
    %13 = arith.cmpi slt, %6, %12 : vector<8x128xi32>
    %14 = arith.andi %11, %13 : vector<8x128xi1>
    %c8_i32_4 = arith.constant 8 : i32
    %15 = vector.broadcast %c8_i32_4 : i32 to vector<8x128xi32>
    %16 = arith.cmpi slt, %10, %15 : vector<8x128xi32>
    %17 = arith.andi %14, %16 : vector<8x128xi1>
    %cst_5 = arith.constant 2.000000e-01 : f32
    %18 = vector.broadcast %cst_5 : f32 to vector<8x128xf32>
    %19 = arith.addf %2, %18 : vector<8x128xf32>
    %cst_6 = arith.constant 0xFF800000 : f32
    %20 = vector.broadcast %cst_6 : f32 to vector<8x128xf32>
    %21 = arith.select %17, %19, %20 : vector<8x128xi1>, vector<8x128xf32>
    %c0_7 = arith.constant 0 : index
    %c0_8 = arith.constant 0 : index
    %22 = vector.load %arg4[%c0_7, %c0_8] : memref<8x1xf32, #tpu.memory_space<vmem>>, vector<8x1xf32>
    %c0_9 = arith.constant 0 : index
    %c0_10 = arith.constant 0 : index
    %23 = vector.load %arg5[%c0_9, %c0_10] : memref<1x128xf32, #tpu.memory_space<vmem>>, vector<1x128xf32>
    %24 = vector.broadcast %22 : vector<8x1xf32> to vector<8x128xf32>
    %25 = arith.subf %21, %24 : vector<8x128xf32>
    %cst_11 = arith.constant 0.000000e+00 : f32
    %26 = vector.broadcast %cst_11 : f32 to vector<8x128xf32>
    %27 = arith.maximumf %25, %26 : vector<8x128xf32>
    %28 = vector.broadcast %23 : vector<1x128xf32> to vector<8x128xf32>
    %29 = arith.subf %21, %28 : vector<8x128xf32>
    %cst_12 = arith.constant 0.000000e+00 : f32
    %30 = vector.broadcast %cst_12 : f32 to vector<8x128xf32>
    %31 = arith.maximumf %29, %30 : vector<8x128xf32>
    %c0_i32 = arith.constant 0 : i32
    %32 = arith.cmpi eq, %arg1, %c0_i32 : i32
    %33 = arith.extui %32 : i1 to i32
    %c0_i32_13 = arith.constant 0 : i32
    %34 = arith.cmpi ne, %33, %c0_i32_13 : i32
    scf.if %34 {
      %cst_23 = arith.constant 0.000000e+00 : f32
      %47 = vector.broadcast %cst_23 : f32 to vector<8x128xf32>
      %c0_24 = arith.constant 0 : index
      %c0_25 = arith.constant 0 : index
      %48 = vector.load %arg8[%c0_24, %c0_25] : memref<8x128xf32, #tpu.memory_space<vmem>>, vector<8x128xf32>
      tpu.vector_store %arg8[%c0_24, %c0_25], %47 {strides = array<i32>} : memref<8x128xf32, #tpu.memory_space<vmem>>, vector<8x128xf32>,
    } else {
    }
    %c128_i32_14 = arith.constant 128 : i32
    %35 = arith.muli %arg1, %c128_i32_14 : i32
    %36 = tpu.assume_multiple %35, 128 : i32
    %c0_15 = arith.constant 0 : index
    %c0_16 = arith.constant 0 : index
    %37 = vector.load %arg8[%c0_15, %c0_16] : memref<8x128xf32, #tpu.memory_space<vmem>>, vector<8x128xf32>
    %38 = arith.addf %27, %31 : vector<8x128xf32>
    %39 = arith.addf %37, %38 : vector<8x128xf32>
    %c0_17 = arith.constant 0 : index
    %c0_18 = arith.constant 0 : index
    %40 = vector.load %arg8[%c0_17, %c0_18] : memref<8x128xf32, #tpu.memory_space<vmem>>, vector<8x128xf32>
    tpu.vector_store %arg8[%c0_17, %c0_18], %39 {strides = array<i32>} : memref<8x128xf32, #tpu.memory_space<vmem>>, vector<8x128xf32>,
    %cst_19 = arith.constant 0.000000e+00 : f32
    %41 = vector.broadcast %cst_19 : f32 to vector<8x128xf32>
    %c0_20 = arith.constant 0 : index
    %42 = arith.index_cast %36 : i32 to index
    %43 = vector.load %arg7[%c0_20, %42] : memref<8x128xf32, #tpu.memory_space<vmem>>, vector<8x128xf32>
    tpu.vector_store %arg7[%c0_20, %42], %41 {strides = array<i32>} : memref<8x128xf32, #tpu.memory_space<vmem>>, vector<8x128xf32>,
    %c0_i32_21 = arith.constant 0 : i32
    %44 = arith.cmpi eq, %arg1, %c0_i32_21 : i32
    %45 = arith.extui %44 : i1 to i32
    %c0_i32_22 = arith.constant 0 : i32
    %46 = arith.cmpi ne, %45, %c0_i32_22 : i32
    scf.if %46 {
      %c0_23 = arith.constant 0 : index
      %c0_24 = arith.constant 0 : index
      %47 = vector.load %arg8[%c0_23, %c0_24] : memref<8x128xf32, #tpu.memory_space<vmem>>, vector<8x128xf32>
      %48 = vector.shape_cast %47 : vector<8x128xf32> to vector<1x8x128xf32>
      %cst_25 = arith.constant dense<0.000000e+00> : vector<1xf32>
      %49 = vector.multi_reduction <add>, %48, %cst_25 [1, 2] : vector<1x8x128xf32> to vector<1xf32>
      %50 = vector.shape_cast %49 : vector<1xf32> to vector<1x1x1xf32>
      %51 = vector.extract %50[0, 0, 0] : f32 from vector<1x1x1xf32>
      %52 = vector.broadcast %51 : f32 to vector<1x8x128xf32>
      %c0_26 = arith.constant 0 : index
      %c0_27 = arith.constant 0 : index
      %c0_28 = arith.constant 0 : index
      %53 = vector.load %arg6[%c0_26, %c0_27, %c0_28] : memref<1x8x128xf32, #tpu.memory_space<vmem>>, vector<1x8x128xf32>
      tpu.vector_store %arg6[%c0_26, %c0_27, %c0_28], %52 {strides = array<i32>} : memref<1x8x128xf32, #tpu.memory_space<vmem>>, vector<1x8x128xf32>,
    } else {
    }
    return
  }
  func.func @transform_0(%arg0: i32, %arg1: i32) -> (i32, i32) {
    %c0_i32 = arith.constant 0 : i32
    %c0_i32_0 = arith.constant 0 : i32
    return %arg0, %c0_i32 : i32, i32
  }
  func.func @transform_1(%arg0: i32, %arg1: i32) -> (i32, i32) {
    %c0_i32 = arith.constant 0 : i32
    %c0_i32_0 = arith.constant 0 : i32
    return %arg1, %c0_i32 : i32, i32
  }
  func.func @transform_2(%arg0: i32, %arg1: i32) -> (i32, i32) {
    %c0_i32 = arith.constant 0 : i32
    %c0_i32_0 = arith.constant 0 : i32
    return %arg0, %c0_i32 : i32, i32
  }
  func.func @transform_3(%arg0: i32, %arg1: i32) -> (i32, i32) {
    %c0_i32 = arith.constant 0 : i32
    %c0_i32_0 = arith.constant 0 : i32
    return %c0_i32, %arg1 : i32, i32
  }
  func.func @transform_4(%arg0: i32, %arg1: i32) -> (i32, i32, i32) {
    %c0_i32 = arith.constant 0 : i32
    %c0_i32_0 = arith.constant 0 : i32
    %c0_i32_1 = arith.constant 0 : i32
    return %arg0, %c0_i32, %c0_i32_0 : i32, i32, i32
  }
  func.func @transform_5(%arg0: i32, %arg1: i32) -> (i32, i32) {
    %c0_i32 = arith.constant 0 : i32
    %c0_i32_0 = arith.constant 0 : i32
    return %arg0, %c0_i32 : i32, i32
  }
}

</mosaic_0001>

<bundles_post_ra>
// kernel: tpu_custom_call.1
= control target key start
LH: loop header
LB: loop body
LE: loop exit
PB: predicated region body
PF: predicated region fallthrough
CT: control target
= control target key end

     0   :  { %11 = vsyncpa [#allocation4], 0  ;;  %v340_v1 = vmov 0.0   ;;  %vm94_vm0 = vcmask 261120   ;;  %vm341_vm1 = vmmov 0   ;;  %v342_v6 = vmov 0   ;;  %s441_s0 = inlined_call_operand.vmem [shape: bf16[8,32], index: 0, kind: input, shape index: {}]   ;;  %s442_s1 = inlined_call_operand.vmem [shape: bf16[128,32], index: 1, kind: input, shape index: {}]   ;;  %s443_s2 = inlined_call_operand.vmem [shape: f32[8,1], index: 2, kind: input, shape index: {}]   ;;  %s444_s3 = inlined_call_operand.vmem [shape: f32[1,128], index: 3, kind: input, shape index: {}]   ;;  %s445_s4 = inlined_call_operand.hbm [shape: f32[1,8,128], index: 4, kind: output, shape index: {0}]   ;;  %s446_s5 = inlined_call_operand.hbm [shape: f32[8,128], index: 5, kind: output, shape index: {1}]  }
   0x1   :  { %v284_v0 = vld [vmem:[%s442_s1] sm:$0xff]   ;;  %256 = vmatprep.subr.bf16.mxu0 %v340_v1  ;;  %192 = vst [vmem:[#allocation5] sm:$0xff] %v340_v1  ;;  %v285_v3 = vld [vmem:[%s442_s1 + $0x8] sm:$0xff]   ;;  %272 = vmatprep.mubr.msk.bf16.mxu0 %vm341_vm1, %v340_v1 }
   0x2   :  { %v99_v2 = vsel %vm94_vm0, %v284_v0, 0  ;;  %v102_v4 = vsel %vm94_vm0, %v285_v3, 0  ;;  %v163_v5 = vld [vmem:[%s443_s2] sm:$0xff]  ;;  %283 = vset.pattern.permute.xlu0 %v342_v6 }
   0x3   :  { %257 = vmatpush3.bf16.xpose.msra.mxu0 %v99_v2 }
   0x4   :  { %258 = vmatprep.subr.bf16.mxu0 %v340_v1 }
   0x5   :  { %12 = vsyncpa [#allocation6], 0  ;;  %167 = vperm.xlu0 %283, %v163_v5   ;;  %v286_v7 = vld [vmem:[%s442_s1 + $0x10] sm:$0xff]   ;;  %v287_v9 = vld [vmem:[%s442_s1 + $0x18] sm:$0xff]   ;;  %v40_v20 = vlaneseq }
   0x6   :  { %v105_v8 = vsel %vm94_vm0, %v286_v7, 0  ;;  %v108_v10 = vsel %vm94_vm0, %v287_v9, 0  ;;  %v288_v11 = vld [vmem:[%s442_s1 + $0x20] sm:$0xff]   ;;  %v289_v13 = vld [vmem:[%s442_s1 + $0x28] sm:$0xff]   ;;  %v290_v15 = vld [vmem:[%s442_s1 + $0x30] sm:$0xff]  }
   0x7   :  { %v111_v12 = vsel %vm94_vm0, %v288_v11, 0  ;;  %v114_v14 = vsel %vm94_vm0, %v289_v13, 0  ;;  %v117_v16 = vsel %vm94_vm0, %v290_v15, 0  ;;  %v291_v17 = vld [vmem:[%s442_s1 + $0x38] sm:$0xff]   ;;  %v22_v19 = vld [vmem:[%s441_s0] sm:$0xf] }
   0x8   :  { %v120_v18 = vsel %vm94_vm0, %v291_v17, 0  ;;  %v41_v21 = vshrl.u32 %v40_v20, 7  ;;  %v46_v22 = vand.u32 127, %v40_v20  ;;  %v246_v26 = vld [vmem:[%s444_s3] ss:$0 sm:$0xff]  ;;  %s343_s0 = smov [#allocation5]  }
   0x9   :  { %s224_s13 = sshll.u32 %s343_s0, 4  ;;  %s225_s13 = int_to_ptr.vmem [resolvable:$true] %s224_s13 }
   0xa   :  { %vm49_vm2 = vcmp.ne.s32.totalorder %v41_v21, %v46_v22  ;;  %vm52_vm3 = vcmp.lt.s32.totalorder %v46_v22, 8  ;;  %s292_s14 = scalar_lea.vmem %s225_s13, 128  ;;  %p297_p1 = scmp.lt.s32.totalorder %s225_s13, %s225_s13 }
   0xb   :  { %259 = vmatpush3.bf16.xpose.msra.mxu0 %v102_v4  ;;  %vm53_vm4 = vmand %vm49_vm2, %vm52_vm3  ;;  %p293_p0 = scmp.ne.s32.totalorder %s225_s13, %s292_s14  ;;  %p298_p2 = scmp.lt.s32.totalorder %s292_s14, %s292_s14 }
   0xc   :  { %260 = vmatprep.subr.bf16.mxu0 %v340_v1 }
   0xd   :  { %p299_p3 = por %p298_p2, %p297_p1 }
   0xf   :  { %p300_p4 = pnand %p299_p3, %p293_p0 }
  0x13   :  { %261 = vmatpush3.bf16.xpose.msra.mxu0 %v105_v8 }
  0x14   :  { %262 = vmatprep.subr.bf16.mxu0 %v340_v1 }
  0x1b   :  { %263 = vmatpush3.bf16.xpose.msra.mxu0 %v108_v10 }
  0x1c   :  { %264 = vmatprep.subr.bf16.mxu0 %v340_v1 }
  0x23   :  { %265 = vmatpush3.bf16.xpose.msra.mxu0 %v111_v12 }
  0x24   :  { %266 = vmatprep.subr.bf16.mxu0 %v340_v1 }
  0x2b   :  { %267 = vmatpush3.bf16.xpose.msra.mxu0 %v114_v14 }
  0x2c   :  { %268 = vmatprep.subr.bf16.mxu0 %v340_v1 }
  0x33   :  { %269 = vmatpush3.bf16.xpose.msra.mxu0 %v117_v16 }
  0x34   :  { %270 = vmatprep.subr.bf16.mxu0 %v340_v1 }
  0x3b   :  { %271 = vmatpush3.bf16.xpose.msra.mxu0 %v120_v18 }
  0x42   :  { %273 = vmatmul.mubr.msk.bf16.vlgmr.msra.gmra.mrb[0].mxu0 %vm94_vm0, %v22_v19 }
  0x84   :  { %v168_v27 = vpop.permute.xlu0 %167 }
 0x115   :  { %v156_v23 = vpop.f32.mrb[0].mxu0 }
 0x116   :  { %v157_v24 = vadd.f32 0.2, %v156_v23  ;;  %v274_v25 = vpop.f32.mrb[1].mxu0 }
 0x117   :  { %v159_v28 = vpop.f32.mrb[2].mxu0 }
 0x118   :  { %v162_v29 = vsel %vm53_vm4, %v157_v24, -inf  ;;  %v275_v30 = vpop.f32.mrb[3].mxu0 }
 0x119   :  { %v170_v31 = vsub.f32 %v162_v29, %v168_v27  ;;  %v178_v32 = vsub.f32 %v162_v29, %v246_v26 }
 0x11b   :  { %v171_v33 = vmax.f32 %v170_v31, 0.0  ;;  %v179_v34 = vmax.f32 %v178_v32, 0.0 }
 0x11d   :  { %v186_v35 = vadd.f32 %v179_v34, %v171_v33 }
 0x11f   :  { %197 = vadd.xlane.f32.xlu0 %v186_v35 }
 0x120   :  { %303 = shalt.err (!%p300_p4)
}
 0x121   :  { %s304_s16 = scalar_lea.hbm %s446_s5, 128 }
 0x122   :  { %p305_p5 = scmp.ne.s32.totalorder %s446_s5, %s304_s16  ;;  %p308_p6 = scmp.lt.u32.totalorder %s304_s16, %s446_s5 }
 0x124   :  { %p310_p7 = pnand %p308_p6, %p305_p5 }
 0x126   :  { %313 = shalt.err (!%p310_p7)
}
 0x127   :  { %227 = dma.vmem_to_hbm [thread:$0]  %s225_s13, 128, %s446_s5, [#allocation6]  }
 0x128   :  { %s344_s23 = smov [#allocation3]  }
 0x129   :  { %s214_s24 = sshll.u32 %s344_s23, 4  ;;  %s215_s24 = int_to_ptr.vmem [resolvable:$true] %s214_s24 }
 0x12a   :  { %s314_s26 = scalar_lea.vmem %s215_s24, 128  ;;  %p319_p9 = scmp.lt.s32.totalorder %s215_s24, %s215_s24 }
 0x12b   :  { %p315_p8 = scmp.ne.s32.totalorder %s215_s24, %s314_s26  ;;  %p320_p10 = scmp.lt.s32.totalorder %s314_s26, %s314_s26 }
 0x12d   :  { %p321_p11 = por %p320_p10, %p319_p9 }
 0x12f   :  { %p322_p12 = pnand %p321_p11, %p315_p8 }
 0x1ac   :  { %v198_v36 = vpop.xlane.xlu0 %197 }
 0x1ad   :  { %v199_v37 = vrot.slane %v198_v36, 4 }
 0x1af   :  { %v200_v38 = vadd.f32 %v199_v37, %v198_v36 }
 0x1b1   :  { %v201_v39 = vrot.slane %v200_v38, 2 }
 0x1b3   :  { %v202_v40 = vadd.f32 %v201_v39, %v200_v38 }
 0x1b5   :  { %v203_v41 = vrot.slane %v202_v40, 1 }
 0x1b7   :  { %v204_v42 = vadd.f32 %v203_v41, %v202_v40 }
 0x1b9   :  { %276 = vpush %v204_v42 }
 0x1ea   :  { %s277_s25 = spop %276 }
 0x1eb   :  { %v206_v43 = vstv %s277_s25 }
 0x1ec   :  { %207 = vst [vmem:[#allocation3] sm:$0xff] %v206_v43 }
 0x1ed   :  { %325 = shalt.err (!%p322_p12)
}
 0x1ee   :  { %s326_s2 = scalar_lea.hbm %s445_s4, 128 }
 0x1ef   :  { %p327_p13 = scmp.ne.s32.totalorder %s445_s4, %s326_s2  ;;  %p330_p0 = scmp.lt.u32.totalorder %s326_s2, %s445_s4 }
 0x1f1   :  { %p332_p1 = pnand %p330_p0, %p327_p13 }
 0x1f3   :  { %335 = shalt.err (!%p332_p1)
}
 0x1f4   :  { %217 = dma.vmem_to_hbm [thread:$0]  %s215_s24, 128, %s445_s4, [#allocation4]  }
 0x1f5   :  { %336 = dma.done.wait [#allocation4], 128  }
 0x1f6   :  { %337 = vsyncadd [#allocation4], 4294967168 }
 0x1f7   :  { %338 = dma.done.wait [#allocation6], 128  }
 0x1f8   :  { %339 = vsyncadd [#allocation6], 4294967168 }
 0x1f9   :  { %234 = vsyncpa [#allocation4], 1 }
 0x1fa   :  { %235 = vsyncpa [#allocation6], 1 }

</bundles_post_ra>
